<compile_context>
chip_gen: v5e
topology: v5e:2x2
jax: 0.10.0
libtpu: 0.0.40
codegen_flags: <defaults>
</compile_context>

<pallas_src>
import functools

import jax
import jax.numpy as jnp
from jax.experimental import pallas as pl
from jax.experimental.pallas import tpu as pltpu


def _round_up(x, m):
    return -(-x // m) * m


# --------------------------------------------------------------------------
# Kernel
# --------------------------------------------------------------------------
def attn_kernel(x_ref, w_ref, o_ref, *, t_valid, t_tile, chunk):
    """One (node-block, T-block) grid step.

    x_ref: (t_tile, nb, H)   input tile (bf16 or f32), native (T, N, H) layout
    w_ref: (1, 1, H)         Linear weight row (f32)
    o_ref: (t_pad, nb)       f32; holds raw logits until the last T step,
                             then the softmax over T in place (accumulator
                             block: same output block across the T grid axis).
    """
    ti = pl.program_id(1)
    w = w_ref[...].astype(jnp.float32)                       # (1, 1, H)
    n_chunks = t_tile // chunk
    t_start = pl.multiple_of(ti * t_tile, 8)                 # row offset into o_ref

    def emit_chunk(row_in_block, row_in_out):
        # Streamed f32 upcast: only one chunk is ever live in f32 (v5e has no
        # bf16 VPU; v6e/v7x do, but f32 accumulation is safe everywhere).
        xc = x_ref[pl.ds(row_in_block, chunk), :, :].astype(jnp.float32)
        # Linear(H, 1) without bias: VPU multiply + XLU lane-reduce over H.
        o_ref[pl.ds(row_in_out, chunk), :] = jnp.sum(xc * w, axis=-1)

    if n_chunks == 1:
        emit_chunk(0, t_start)
    else:
        def body(c, carry):
            r0 = pl.multiple_of(c * chunk, 8)
            emit_chunk(r0, pl.multiple_of(t_start + r0, 8))
            return carry
        jax.lax.fori_loop(0, n_chunks, body, 0)

    # Finalize the softmax over T once all T blocks have deposited their
    # logits into the resident output block.
    @pl.when(ti == pl.num_programs(1) - 1)
    def _finalize():
        logits = o_ref[...]                                  # (t_pad, nb) f32
        t_pad = logits.shape[0]
        if t_pad > t_valid:                                  # static: padded T rows exist
            rows = jax.lax.broadcasted_iota(jnp.int32, logits.shape, 0)
            logits = jnp.where(rows < t_valid, logits, -jnp.inf)
        m = jnp.max(logits, axis=0, keepdims=True)           # (1, nb)
        e = jnp.exp(logits - m)                              # EUP
        s = jnp.sum(e, axis=0, keepdims=True)                # (1, nb)
        o_ref[...] = e * (1.0 / s)                           # exact normalization


# --------------------------------------------------------------------------
# Tile / VMEM budgeting
# --------------------------------------------------------------------------
def _vmem_caps():
    """Generation-aware VMEM budgeting.

    v5e/v6e: 128 MiB VMEM per core -> limit 96 MiB.  v7x: 64 MiB -> limit
    48 MiB (per-core; the 'parallel' node axis still shards across both TCs).
    Falls back to the conservative 64 MiB figure if the query fails.
    """
    cap = 64 << 20
    try:
        info = pltpu.get_tpu_info()
        cap = int(getattr(info, "vmem_capacity_bytes", cap)) or cap
    except Exception:
        pass
    vmem_limit = min((cap * 3) // 4, 96 << 20)
    tile_budget = (vmem_limit * 3) // 5     # headroom for compiler scratch etc.
    return tile_budget, vmem_limit


def _pick_tiles(T, N, H, in_bytes, budget):
    """Pick (t_tile, node_tile) so the per-step VMEM footprint fits `budget`.

    node_tile is the output lane axis: it must be a multiple of 128 or == N.
    t_tile must be == T or a multiple of 8 (aligned sublane stores into the
    resident output block).  Preference: biggest node tile first (lane-dense
    DMAs / stores, fewest grid steps), then biggest T tile.
    """
    h_lane = _round_up(H, 128)              # lane padding of the minor H dim in VMEM

    def footprint(tt, nb):
        n_t = -(-T // tt)
        t_pad = n_t * tt
        nb_sub = _round_up(nb, 16)          # sublane padding (bf16-safe)
        nb_lane = _round_up(nb, 128)
        ch = 8 if tt % 8 == 0 else tt
        f = 2 * tt * nb_sub * h_lane * in_bytes       # X block, double-buffered
        f += 3 * _round_up(t_pad, 8) * nb_lane * 4    # resident out (x2 bufs) + softmax temp
        f += 2 * ch * nb_sub * h_lane * 4             # streamed f32 chunk working set
        return f

    if N <= 128:
        nb_cands = [N]
    else:
        nb_cands = ([N] if N <= 2048 else []) + [c for c in (2048, 1024, 512, 256, 128) if c < N]
    tt_cands = [T] + [c for c in (1024, 512, 256, 128, 64, 32, 16, 8) if c < T]

    for nb in nb_cands:
        for tt in tt_cands:
            if footprint(tt, nb) <= budget:
                # Prefer >=2 node blocks when N is large so the "parallel"
                # axis can shard across the two TensorCores on v7x.
                if nb >= N and N >= 1024:
                    half = _round_up(-(-N // 2), 128)
                    if 128 <= half < N and footprint(tt, half) <= budget:
                        nb = half
                return tt, nb
    return (8 if T >= 8 else T), (128 if N >= 128 else N)   # last-resort tiny tile


# --------------------------------------------------------------------------
# Wrapper
# --------------------------------------------------------------------------
def attn_forward(x, weight, bias=None, *, node_tile=None, t_tile=None):
    """Forward pass of `attn` (eval mode).

    x:      (T, N, H) float32 or bfloat16 RNN outputs, native layout.
    weight: (1, H) from nn.Linear(H, 1).
    bias:   ignored — it is constant over T, so it cancels exactly under the
            softmax over T (shift invariance).
    Returns (T, N, 1) float32 attention weights (sum to 1 over T per node).
    """
    T, N, H = x.shape
    in_bytes = jnp.dtype(x.dtype).itemsize
    budget, vmem_limit = _vmem_caps()

    tt_auto, nb_auto = _pick_tiles(T, N, H, in_bytes, budget)
    tt = min(t_tile, T) if t_tile is not None else tt_auto
    nb = min(node_tile, N) if node_tile is not None else nb_auto
    if nb < N and nb % 128 != 0:
        raise ValueError("node_tile must be a multiple of 128 or >= n_nodes")
    if tt < T and tt % 8 != 0:
        raise ValueError("t_tile must be a multiple of 8 or >= n_iters")

    n_t = pl.cdiv(T, tt)
    n_n = pl.cdiv(N, nb)
    t_pad = n_t * tt
    chunk = 8 if tt % 8 == 0 else tt

    w3 = weight.reshape(1, 1, H).astype(jnp.float32)

    kernel = functools.partial(attn_kernel, t_valid=T, t_tile=tt, chunk=chunk)

    out2d = pl.pallas_call(
        kernel,
        out_shape=jax.ShapeDtypeStruct((t_pad, N), jnp.float32),
        grid=(n_n, n_t),
        in_specs=[
            # X in native (T, N, H) layout — no HBM transpose pass.
            pl.BlockSpec((tt, nb, H), lambda ni, ti: (ti, ni, 0)),
            # Tiny weight row, replicated to every grid step.
            pl.BlockSpec((1, 1, H), lambda ni, ti: (0, 0, 0)),
        ],
        # Same output block across the T axis -> VMEM-resident accumulator.
        out_specs=pl.BlockSpec((t_pad, nb), lambda ni, ti: (0, ni)),
        compiler_params=pltpu.CompilerParams(
            dimension_semantics=("parallel", "arbitrary"),
            vmem_limit_bytes=int(vmem_limit),
        ),
    )(x, w3)

    if t_pad != T:
        out2d = out2d[:T]                       # drop padded T rows (tiny slice)
    return out2d.reshape(T, N, 1)


def attn_reference(x, weight, bias=None):
    logits = jnp.einsum("tnh,oh->tno", x.astype(jnp.float32), weight.astype(jnp.float32))
    if bias is not None:
        logits = logits + bias.reshape(1, 1, -1).astype(jnp.float32)
    return jax.nn.softmax(logits, axis=0)


# --------------------------------------------------------------------------
# Self-test
# --------------------------------------------------------------------------
if __name__ == "__main__":
    n_iters, n_nodes, n_hids = 8, 16, 32

    key = jax.random.PRNGKey(0)
    kx, kw, kb = jax.random.split(key, 3)

    bound = 1.0 / (n_hids ** 0.5)
    weight = jax.random.uniform(kw, (1, n_hids), jnp.float32, -bound, bound)
    bias = jax.random.uniform(kb, (1,), jnp.float32, -bound, bound)
    x = jax.random.normal(kx, (n_iters, n_nodes, n_hids), jnp.float32)

    out = jax.block_until_ready(attn_forward(x, weight, bias))
    # Reference includes the bias to confirm dropping it in-kernel is exact.
    ref = attn_reference(x, weight, bias)
    assert out.shape == (n_iters, n_nodes, 1)
    assert float(jnp.max(jnp.abs(out - ref))) < 1e-5
    assert bool(jnp.allclose(jnp.sum(out, axis=0), 1.0, atol=1e-5))

    # Secondary check (still small): bf16 input, tiled T with a remainder
    # (online accumulation into the resident output block + -inf masking),
    # chunked in-kernel reduction, and a remainder node block.
    T2, N2, H2 = 20, 160, 32
    k2a, k2b = jax.random.split(jax.random.PRNGKey(1))
    w2 = jax.random.uniform(k2a, (1, H2), jnp.float32, -bound, bound)
    x2 = jax.random.normal(k2b, (T2, N2, H2), jnp.float32).astype(jnp.bfloat16)
    out2 = jax.block_until_ready(attn_forward(x2, w2, None, node_tile=128, t_tile=16))
    ref2 = attn_reference(x2, w2, None)
    assert out2.shape == (T2, N2, 1)
    assert float(jnp.max(jnp.abs(out2 - ref2))) < 2e-3
    assert bool(jnp.allclose(jnp.sum(out2, axis=0), 1.0, atol=2e-3))

    print("KERNEL_OK")
</pallas_src>

<mosaic_0001>
module attributes {stable_mosaic.version = 11 : i64} {
  func.func @attn_kernel(%arg0: i32, %arg1: i32, %arg2: memref<8x16x32xf32, #tpu.memory_space<vmem>>, %arg3: memref<1x1x32xf32, #tpu.memory_space<vmem>>, %arg4: memref<8x16xf32, #tpu.memory_space<vmem>>) attributes {dimension_semantics = [#tpu.dimension_semantics<parallel>, #tpu.dimension_semantics<arbitrary>], iteration_bounds = array<i64: 1, 1>, scalar_prefetch = 0 : i64, scratch_operands = 0 : i64, tpu.core_type = #tpu.core_type<tc>, window_params = [{transform_indices = @transform_0, window_bounds = array<i64: 8, 16, 32>}, {pipeline_mode = #tpu.pipeline_mode<synchronous>, transform_indices = @transform_1, window_bounds = array<i64: 1, 1, 32>}, {transform_indices = @transform_2, window_bounds = array<i64: 8, 16>}]} {
    %c0 = arith.constant 0 : index
    %c0_0 = arith.constant 0 : index
    %c0_1 = arith.constant 0 : index
    %0 = vector.load %arg3[%c0, %c0_0, %c0_1] : memref<1x1x32xf32, #tpu.memory_space<vmem>>, vector<1x1x32xf32>
    %c8_i32 = arith.constant 8 : i32
    %1 = arith.muli %arg1, %c8_i32 : i32
    %2 = tpu.assume_multiple %1, 8 : i32
    %c0_2 = arith.constant 0 : index
    %c0_3 = arith.constant 0 : index
    %c0_4 = arith.constant 0 : index
    %3 = vector.load %arg2[%c0_2, %c0_3, %c0_4] : memref<8x16x32xf32, #tpu.memory_space<vmem>>, vector<8x16x32xf32>
    %4 = vector.broadcast %0 : vector<1x1x32xf32> to vector<8x16x32xf32>
    %5 = arith.mulf %3, %4 : vector<8x16x32xf32>
    %cst = arith.constant dense<0.000000e+00> : vector<8x16xf32>
    %6 = vector.multi_reduction <add>, %5, %cst [2] : vector<8x16x32xf32> to vector<8x16xf32>
    %7 = arith.index_cast %2 : i32 to index
    %c0_5 = arith.constant 0 : index
    %8 = vector.load %arg4[%7, %c0_5] : memref<8x16xf32, #tpu.memory_space<vmem>>, vector<8x16xf32>
    tpu.vector_store %arg4[%7, %c0_5], %6 {strides = array<i32>} : memref<8x16xf32, #tpu.memory_space<vmem>>, vector<8x16xf32>,
    %c0_i32 = arith.constant 0 : i32
    %9 = arith.cmpi eq, %arg1, %c0_i32 : i32
    %10 = arith.extui %9 : i1 to i32
    %c0_i32_6 = arith.constant 0 : i32
    %11 = arith.cmpi ne, %10, %c0_i32_6 : i32
    scf.if %11 {
      %c0_7 = arith.constant 0 : index
      %c0_8 = arith.constant 0 : index
      %12 = vector.load %arg4[%c0_7, %c0_8] : memref<8x16xf32, #tpu.memory_space<vmem>>, vector<8x16xf32>
      %cst_9 = arith.constant dense<0xFF800000> : vector<16xf32>
      %13 = vector.multi_reduction <maximumf>, %12, %cst_9 [0] : vector<8x16xf32> to vector<16xf32>
      %14 = vector.shape_cast %13 : vector<16xf32> to vector<1x16xf32>
      %15 = vector.broadcast %14 : vector<1x16xf32> to vector<8x16xf32>
      %16 = arith.subf %12, %15 : vector<8x16xf32>
      %17 = math.exp %16 : vector<8x16xf32>
      %cst_10 = arith.constant dense<0.000000e+00> : vector<16xf32>
      %18 = vector.multi_reduction <add>, %17, %cst_10 [0] : vector<8x16xf32> to vector<16xf32>
      %19 = vector.shape_cast %18 : vector<16xf32> to vector<1x16xf32>
      %cst_11 = arith.constant 1.000000e+00 : f32
      %20 = vector.broadcast %cst_11 : f32 to vector<1x16xf32>
      %21 = arith.divf %20, %19 : vector<1x16xf32>
      %22 = vector.broadcast %21 : vector<1x16xf32> to vector<8x16xf32>
      %23 = arith.mulf %17, %22 : vector<8x16xf32>
      %c0_12 = arith.constant 0 : index
      %c0_13 = arith.constant 0 : index
      %24 = vector.load %arg4[%c0_12, %c0_13] : memref<8x16xf32, #tpu.memory_space<vmem>>, vector<8x16xf32>
      tpu.vector_store %arg4[%c0_12, %c0_13], %23 {strides = array<i32>} : memref<8x16xf32, #tpu.memory_space<vmem>>, vector<8x16xf32>,
    } else {
    }
    return
  }
  func.func @transform_0(%arg0: i32, %arg1: i32) -> (i32, i32, i32) {
    %c0_i32 = arith.constant 0 : i32
    %c0_i32_0 = arith.constant 0 : i32
    return %arg1, %arg0, %c0_i32 : i32, i32, i32
  }
  func.func @transform_1(%arg0: i32, %arg1: i32) -> (i32, i32, i32) {
    %c0_i32 = arith.constant 0 : i32
    %c0_i32_0 = arith.constant 0 : i32
    %c0_i32_1 = arith.constant 0 : i32
    %c0_i32_2 = arith.constant 0 : i32
    return %c0_i32, %c0_i32_0, %c0_i32_1 : i32, i32, i32
  }
  func.func @transform_2(%arg0: i32, %arg1: i32) -> (i32, i32) {
    %c0_i32 = arith.constant 0 : i32
    %c0_i32_0 = arith.constant 0 : i32
    return %c0_i32, %arg0 : i32, i32
  }
}

</mosaic_0001>

<bundles_post_ra>
// kernel: tpu_custom_call.1
= control target key start
LH: loop header
LB: loop body
LE: loop exit
PB: predicated region body
PF: predicated region fallthrough
CT: control target
= control target key end

     0   :  { %7 = vsyncpa [#allocation3], 0  ;;  %s392_s0 = inlined_call_operand.hbm [shape: f32[8,16,32], index: 0, kind: input, shape index: {}]   ;;  %s393_s1 = inlined_call_operand.hbm [shape: f32[1,1,32], index: 1, kind: input, shape index: {}]   ;;  %s394_s2 = inlined_call_operand.hbm [shape: f32[8,16], index: 2, kind: output, shape index: {}]  }
   0x1   :  { %8 = vsyncpa [#allocation6], 0 }
   0x2   :  { %9 = vsyncpa [#allocation4], 0  ;;  %s14_s11 = sshll.u32 %s392_s0, 4  ;;  %s335_s12 = smov [#allocation2]   ;;  %s15_s11 = int_to_ptr.hbm [resolvable:$true] %s14_s11 }
   0x3   :  { %s16_s13 = sshll.u32 %s335_s12, 4  ;;  %s28_s16 = sshll.u32 %s393_s1, 4  ;;  %s17_s13 = int_to_ptr.vmem [resolvable:$true] %s16_s13  ;;  %s29_s16 = int_to_ptr.hbm [resolvable:$true] %s28_s16 }
   0x4   :  { %s336_s17 = smov 128   ;;  %s337_s18 = smov 8  }
   0x5   :  { %22 = dma.hbm_to_vmem [thread:$0]  %s15_s11, 2048, %s17_s13, [#allocation3], %s336_s17, %s336_s17, %s337_s18  }
   0x6   :  { %s338_s19 = smov [#allocation5]  }
   0x7   :  { %s30_s20 = sshll.u32 %s338_s19, 4  ;;  %s31_s20 = int_to_ptr.vmem [resolvable:$true] %s30_s20 }
   0x8   :  { %33 = dma.hbm_to_vmem [thread:$0]  %s29_s16, 16, %s31_s20, [#allocation6]  }
   0x9   :  { %329 = dma.done.wait [#allocation3], 2048  }
   0xa   :  { %330 = vsyncadd [#allocation3], 4294965248 }
   0xb   :  { %331 = dma.done.wait [#allocation6], 16  }
   0xc   :  { %332 = vsyncadd [#allocation6], 4294967280  ;;  %v48_v0 = vld [vmem:[#allocation2 + $0x20] sm:$0xff]  ;;  %vm79_vm0 = vcmask 261120   ;;  %v46_v2 = vld [vmem:[#allocation2 + $0x10] sm:$0xff]  ;;  %v144_v57 = vlaneseq  ;;  %vm149_vm1 = vcmask 130112  }
   0xd   :  { %v252_v1 = vld [vmem:[#allocation5] ss:$0 sm:$0xff]  ;;  %v49_v7 = vld [vmem:[#allocation2 + $0x28] sm:$0xff]  ;;  %v47_v8 = vld [vmem:[#allocation2 + $0x18] sm:$0xff]  ;;  %vm172_vm2 = vcmask 1041409   ;;  %vm174_vm3 = vcmask 1042434  }
   0xe   :  { %v44_v3 = vld [vmem:[#allocation2] sm:$0xff]  ;;  %v67_v4 = vmul.f32 %v252_v1, %v48_v0  ;;  %v65_v5 = vmul.f32 %v252_v1, %v46_v2  ;;  %v45_v12 = vld [vmem:[#allocation2 + $0x8] sm:$0xff]  ;;  %v68_v13 = vmul.f32 %v252_v1, %v49_v7  ;;  %v66_v14 = vmul.f32 %v252_v1, %v47_v8  ;;  %v51_v19 = vld [vmem:[#allocation2 + $0x38] sm:$0xff]  ;;  %s339_s0 = smov [#allocation7]   ;;  %s236_s23 = sshll.u32 %s394_s2, 4  ;;  %s237_s23 = int_to_ptr.hbm [resolvable:$true] %s236_s23 }
   0xf   :  { %v63_v6 = vmul.f32 %v252_v1, %v44_v3  ;;  %v64_v15 = vmul.f32 %v252_v1, %v45_v12  ;;  %v52_v20 = vld [vmem:[#allocation2 + $0x40] sm:$0xff]  ;;  %v50_v21 = vld [vmem:[#allocation2 + $0x30] sm:$0xff]  ;;  %v70_v22 = vmul.f32 %v252_v1, %v51_v19  ;;  %v55_v29 = vld [vmem:[#allocation2 + $0x58] sm:$0xff]  ;;  %v145_v59 = vand.u32 127, %v144_v57  ;;  %s234_s1 = sshll.u32 %s339_s0, 4  ;;  %s235_s1 = int_to_ptr.vmem [resolvable:$true] %s234_s1 }
  0x10   :  { %v92_v9 = vsel %vm79_vm0, %v67_v4, 0.0  ;;  %v86_v10 = vsel %vm79_vm0, %v65_v5, 0.0  ;;  %v95_v16 = vsel %vm79_vm0, %v68_v13, 0.0  ;;  %v89_v17 = vsel %vm79_vm0, %v66_v14, 0.0  ;;  %v54_v28 = vld [vmem:[#allocation2 + $0x50] sm:$0xff]  ;;  %v53_v30 = vld [vmem:[#allocation2 + $0x48] sm:$0xff] }
  0x11   :  { %v80_v11 = vsel %vm79_vm0, %v63_v6, 0.0  ;;  %93 = vadd.xlane.f32.xlu2 %v92_v9  ;;  %87 = vadd.xlane.f32.xlu1 %v86_v10  ;;  %v83_v18 = vsel %vm79_vm0, %v64_v15, 0.0  ;;  %v71_v23 = vmul.f32 %v252_v1, %v52_v20  ;;  %v69_v24 = vmul.f32 %v252_v1, %v50_v21  ;;  %v57_v37 = vld [vmem:[#allocation2 + $0x68] sm:$0xff]  ;;  %v58_v38 = vld [vmem:[#allocation2 + $0x70] sm:$0xff]  ;;  %v56_v39 = vld [vmem:[#allocation2 + $0x60] sm:$0xff] }
  0x12   :  { %81 = vadd.xlane.f32.xlu0 %v80_v11  ;;  %v101_v25 = vsel %vm79_vm0, %v70_v22, 0.0  ;;  %v73_v31 = vmul.f32 %v252_v1, %v54_v28  ;;  %v74_v32 = vmul.f32 %v252_v1, %v55_v29  ;;  %v72_v33 = vmul.f32 %v252_v1, %v53_v30  ;;  %v59_v46 = vld [vmem:[#allocation2 + $0x78] sm:$0xff] }
  0x13   :  { %v104_v26 = vsel %vm79_vm0, %v71_v23, 0.0  ;;  %v98_v27 = vsel %vm79_vm0, %v69_v24, 0.0  ;;  %v76_v40 = vmul.f32 %v252_v1, %v57_v37  ;;  %v77_v41 = vmul.f32 %v252_v1, %v58_v38 }
  0x14   :  { %v110_v34 = vsel %vm79_vm0, %v73_v31, 0.0  ;;  %v113_v35 = vsel %vm79_vm0, %v74_v32, 0.0  ;;  %v107_v36 = vsel %vm79_vm0, %v72_v33, 0.0  ;;  %v75_v42 = vmul.f32 %v252_v1, %v56_v39 }
  0x15   :  { %v119_v43 = vsel %vm79_vm0, %v76_v40, 0.0  ;;  %v122_v44 = vsel %vm79_vm0, %v77_v41, 0.0  ;;  %v78_v47 = vmul.f32 %v252_v1, %v59_v46  ;;  %v147_v60 = vadd.s32 4294967288, %v145_v59 }
  0x16   :  { %v116_v45 = vsel %vm79_vm0, %v75_v42, 0.0  ;;  %vm176_vm4 = vcmask 1043459   ;;  %vm178_vm5 = vcmask 1044484   ;;  %vm180_vm6 = vcmask 1045509  }
  0x17   :  { %v125_v48 = vsel %vm79_vm0, %v78_v47, 0.0  ;;  %vm182_vm7 = vcmask 1046534   ;;  %vm184_vm8 = vcmask 1047559   ;;  %vm188_vm9 = vcmask 130048  }
  0x19   :  { %96 = vadd.xlane.f32.xlu2 %v95_v16  ;;  %90 = vadd.xlane.f32.xlu1 %v89_v17 }
  0x1a   :  { %84 = vadd.xlane.f32.xlu0 %v83_v18 }
  0x21   :  { %102 = vadd.xlane.f32.xlu1 %v101_v25  ;;  %105 = vadd.xlane.f32.xlu2 %v104_v26 }
  0x22   :  { %99 = vadd.xlane.f32.xlu0 %v98_v27 }
  0x29   :  { %111 = vadd.xlane.f32.xlu1 %v110_v34  ;;  %114 = vadd.xlane.f32.xlu2 %v113_v35 }
  0x2a   :  { %108 = vadd.xlane.f32.xlu0 %v107_v36 }
  0x31   :  { %120 = vadd.xlane.f32.xlu1 %v119_v43  ;;  %123 = vadd.xlane.f32.xlu2 %v122_v44 }
  0x32   :  { %117 = vadd.xlane.f32.xlu0 %v116_v45 }
  0x3a   :  { %126 = vadd.xlane.f32.xlu0 %v125_v48 }
  0x84   :  { %v94_v49 = vpop.xlane.xlu2 %93  ;;  %v88_v50 = vpop.xlane.xlu1 %87 }
  0x85   :  { %v82_v51 = vpop.xlane.xlu0 %81  ;;  %v151_v63 = vperm.slane %v88_v50, %v145_v59  ;;  %v154_v4 = vperm.slane %v94_v49, %v145_v59 }
  0x86   :  { %v146_v3 = vperm.slane %v82_v51, %v145_v59 }
  0x8c   :  { %v91_v52 = vpop.xlane.xlu1 %90  ;;  %v97_v53 = vpop.xlane.xlu2 %96 }
  0x8d   :  { %v85_v54 = vpop.xlane.xlu0 %84  ;;  %v152_v0 = vperm.slane %v91_v52, %v147_v60  ;;  %v155_v5 = vperm.slane %v97_v53, %v147_v60 }
  0x8e   :  { %v148_v1 = vperm.slane %v85_v54, %v147_v60 }
  0x8f   :  { %v153_v6 = vsel %vm149_vm1, %v152_v0, %v151_v63  ;;  %v156_v14 = vsel %vm149_vm1, %v155_v5, %v154_v4 }
  0x90   :  { %v150_v7 = vsel %vm149_vm1, %v148_v1, %v146_v3 }
  0x91   :  { %v173_v15 = vsel %vm172_vm2, %v153_v6, %v150_v7 }
  0x92   :  { %v175_v23 = vsel %vm174_vm3, %v156_v14, %v173_v15 }
  0x94   :  { %v103_v55 = vpop.xlane.xlu1 %102  ;;  %v106_v58 = vpop.xlane.xlu2 %105 }
  0x95   :  { %v100_v56 = vpop.xlane.xlu0 %99  ;;  %v158_v8 = vperm.slane %v103_v55, %v147_v60  ;;  %v160_v10 = vperm.slane %v106_v58, %v145_v59 }
  0x96   :  { %v157_v9 = vperm.slane %v100_v56, %v145_v59 }
  0x98   :  { %v159_v16 = vsel %vm149_vm1, %v158_v8, %v157_v9 }
  0x99   :  { %v177_v24 = vsel %vm176_vm4, %v159_v16, %v175_v23 }
  0x9c   :  { %v112_v61 = vpop.xlane.xlu1 %111  ;;  %v115_v2 = vpop.xlane.xlu2 %114 }
  0x9d   :  { %v109_v62 = vpop.xlane.xlu0 %108  ;;  %v163_v17 = vperm.slane %v112_v61, %v145_v59  ;;  %v164_v18 = vperm.slane %v115_v2, %v147_v60 }
  0x9e   :  { %v161_v11 = vperm.slane %v109_v62, %v147_v60 }
  0x9f   :  { %v165_v26 = vsel %vm149_vm1, %v164_v18, %v163_v17 }
  0xa0   :  { %v162_v19 = vsel %vm149_vm1, %v161_v11, %v160_v10 }
  0xa1   :  { %v179_v25 = vsel %vm178_vm5, %v162_v19, %v177_v24 }
  0xa2   :  { %v181_v31 = vsel %vm180_vm6, %v165_v26, %v179_v25 }
  0xa4   :  { %v121_v13 = vpop.xlane.xlu1 %120  ;;  %v124_v22 = vpop.xlane.xlu2 %123 }
  0xa5   :  { %v118_v12 = vpop.xlane.xlu0 %117  ;;  %v167_v20 = vperm.slane %v121_v13, %v147_v60  ;;  %v169_v27 = vperm.slane %v124_v22, %v145_v59 }
  0xa6   :  { %v166_v21 = vperm.slane %v118_v12, %v145_v59 }
  0xa8   :  { %v168_v28 = vsel %vm149_vm1, %v167_v20, %v166_v21 }
  0xa9   :  { %v183_v32 = vsel %vm182_vm7, %v168_v28, %v181_v31 }
  0xad   :  { %v127_v29 = vpop.xlane.xlu0 %126 }
  0xae   :  { %v170_v30 = vperm.slane %v127_v29, %v147_v60 }
  0xb0   :  { %v171_v33 = vsel %vm149_vm1, %v170_v30, %v169_v27 }
  0xb1   :  { %v185_v34 = vsel %vm184_vm8, %v171_v33, %v183_v32 }
  0xb2   :  { %189 = vst.msk [vmem:[#allocation7] sm:$0xff] %vm188_vm9, %v185_v34 }
  0xb9   :  { %v194_v35 = vld [vmem:[#allocation7] sm:$0xff] }
  0xba   :  { %v195_v36 = vsel %vm188_vm9, %v194_v35, -inf }
  0xbb   :  { %v196_v37 = vrot.slane %v195_v36, 4 }
  0xbd   :  { %v197_v38 = vmax.f32 %v195_v36, %v196_v37 }
  0xbf   :  { %v198_v39 = vrot.slane %v197_v38, 2 }
  0xc1   :  { %v199_v40 = vmax.f32 %v197_v38, %v198_v39 }
  0xc3   :  { %v200_v41 = vrot.slane %v199_v40, 1 }
  0xc5   :  { %v201_v42 = vmax.f32 %v199_v40, %v200_v41 }
  0xc7   :  { %v202_v43 = vsub.f32 %v194_v35, %v201_v42 }
  0xc9   :  { %v203_v44 = vmul.f32 1.442695, %v202_v43 }
  0xcb   :  { %253 = vpow2.f32 %v203_v44 }
  0xd1   :  { %v254_v45 = vpop.eup %253 }
  0xd2   :  { %v205_v46 = vsel %vm188_vm9, %v254_v45, 0.0 }
  0xd3   :  { %v206_v47 = vrot.slane %v205_v46, 4 }
  0xd5   :  { %v207_v48 = vadd.f32 %v206_v47, %v205_v46 }
  0xd7   :  { %v208_v49 = vrot.slane %v207_v48, 2 }
  0xd9   :  { %v209_v50 = vadd.f32 %v208_v49, %v207_v48 }
  0xdb   :  { %v210_v51 = vrot.slane %v209_v50, 1 }
  0xdd   :  { %v211_v52 = vadd.f32 %v210_v51, %v209_v50 }
  0xdf   :  { %255 = vrcp.f32 %v211_v52  ;;  %v223_v56 = vand.u32 2147483648, %v211_v52  ;;  %v221_v58 = vand.u32 2147483647, %v211_v52  ;;  %vm217_vm11 = vweird.f32 %v211_v52 }
  0xe1   :  { %v224_v60 = vor.u32 1.1754944e-38, %v223_v56  ;;  %vm222_vm13 = vcmp.eq.f32.partialorder %v221_v58, 8.507059e+37 }
  0xe5   :  { %v256_v53 = vpop.eup %255 }
  0xe6   :  { %v213_v54 = vmul.f32 %v256_v53, %v211_v52  ;;  %vm218_vm10 = vweird.f32 %v256_v53 }
  0xe7   :  { %vm219_vm12 = vmor %vm217_vm11, %vm218_vm10 }
  0xe8   :  { %v214_v55 = vsub.f32 1.0, %v213_v54 }
  0xea   :  { %v215_v57 = vmul.f32 %v256_v53, %v214_v55 }
  0xec   :  { %v216_v59 = vadd.f32 %v256_v53, %v215_v57 }
  0xee   :  { %v220_v61 = vsel %vm219_vm12, %v256_v53, %v216_v59 }
  0xef   :  { %v225_v62 = vsel %vm222_vm13, %v224_v60, %v220_v61 }
  0xf0   :  { %v227_v63 = vmul.f32 %v254_v45, %v225_v62 }
  0xf2   :  { %228 = vst.msk [vmem:[#allocation7] sm:$0xff] %vm188_vm9, %v227_v63 }
  0xf3   :  { %239 = dma.vmem_to_hbm [thread:$0]  %s235_s1, 128, %s237_s23, [#allocation4]  }
  0xf4   :  { %333 = dma.done.wait [#allocation4], 128  }
  0xf5   :  { %334 = vsyncadd [#allocation4], 4294967168 }
  0xf6   :  { %244 = vsyncpa [#allocation3], 1 }
  0xf7   :  { %245 = vsyncpa [#allocation6], 1 }
  0xf8   :  { %246 = vsyncpa [#allocation4], 1 }

</bundles_post_ra>
